<compile_context>
chip_gen: v7x
topology: tpu7x:2x2x1
jax: 0.10.0
libtpu: 0.0.40
codegen_flags: <defaults>
</compile_context>

<pallas_src>
import functools

import jax
import jax.numpy as jnp
from jax.experimental import pallas as pl
from jax.experimental.pallas import tpu as pltpu


def _round_up(x, m):
    return (x + m - 1) // m * m


def _decoder_proj_kernel(x_ref, w_ref, b_ref, o_ref, *, inv_temp):
    # (tm, H) bf16 @ (H, tv) bf16 -> f32 accumulation on the MXU, + bias,
    # optional temperature scaling, stored as bf16 logits.
    acc = jnp.dot(x_ref[...], w_ref[...], preferred_element_type=jnp.float32)
    acc = acc + b_ref[...]
    if inv_temp != 1.0:
        acc = acc * inv_temp
    o_ref[...] = acc.astype(o_ref.dtype)


def decoder_output_proj(x, w, b, *, temperature=1.0, out_dtype=jnp.bfloat16,
                        tm_target=256):
    """x: (M, H) bf16, w: (H, V) bf16, b: (1, V) f32 -> (M, V) logits / T.

    Tiling:
      * M: a single block of round_up(M, 16) rows whenever that fits in a few
        MiB (always true for decode-sized M) so the activation is DMA'd once;
        otherwise tiled with tm_target and the last block is partial,
      * V: lane-dense tv (multiple of 128), sized against a generation-aware
        VMEM budget; last block may be partial (no padding, no output slice),
      * H (K axis): untiled.  TODO(synk): add a K grid axis + f32 accumulator
        scratch if H * tv ever outgrows the VMEM budget (H >= ~16K).
    """
    M, H = x.shape
    Hw, V = w.shape
    assert H == Hw and b.shape == (1, V)

    inv_temp = 1.0 if (temperature is None or float(temperature) == 0.0) \
        else float(1.0 / float(temperature))

    # ---- generation-aware VMEM budget -----------------------------------
    try:
        info = pltpu.get_tpu_info()
        vmem_cap = int(getattr(info, "vmem_capacity_bytes",
                               64 * 1024 * 1024))
    except Exception:
        vmem_cap = 64 * 1024 * 1024          # safe for v7x (64 MiB / TC)
    vmem_budget = int(vmem_cap * 0.45)        # ~28 MiB on v7x, ~57 MiB on v5e/v6e
    vmem_limit = min(int(vmem_cap * 0.62), 100 * 1024 * 1024)

    # ---- tile selection --------------------------------------------------
    # bf16 packs 16 sublanes per vreg -> round the row tile up to 16.
    m_full = _round_up(M, 16)
    if m_full * H * 2 <= 4 * 1024 * 1024:
        tm = m_full                           # whole activation in one block
    else:
        tm = _round_up(min(tm_target, m_full), 16)
    n_m = pl.cdiv(M, tm)

    v_cap = _round_up(V, 128)
    tv = 128
    for cand in (8192, 4096, 2048, 1024, 512, 256, 128):
        cand = min(cand, v_cap)
        est = (2 * (tm * H * 2)       # activation tile, bf16, double-buffered
               + 2 * (H * cand * 2)   # weight tile, bf16
               + 2 * (1 * cand * 4)   # bias tile, f32
               + 2 * (tm * cand * 2)) # output tile, bf16
        if est <= vmem_budget:
            tv = cand
            break
    n_v = pl.cdiv(V, tv)

    kernel = functools.partial(_decoder_proj_kernel, inv_temp=inv_temp)

    # Activation is re-read once per V block only when the M axis is tiled.
    x_reads = n_v if n_m > 1 else 1
    cost = pl.CostEstimate(
        flops=2 * M * H * V,
        transcendentals=0,
        bytes_accessed=int(x_reads * M * H * 2   # activations (bf16)
                           + H * V * 2           # weights (bf16)
                           + V * 4               # bias (f32)
                           + M * V * 2),         # logits out (bf16)
    )

    # TODO(synk): if the profile shows exposed DMA at V-block boundaries, add
    # pipeline_mode=pl.Buffered(3) on the weight BlockSpec (and shrink tv).
    return pl.pallas_call(
        kernel,
        out_shape=jax.ShapeDtypeStruct((M, V), out_dtype),
        grid_spec=pltpu.PrefetchScalarGridSpec(
            num_scalar_prefetch=0,
            # V outer, M inner: the (H, tv) weight/bias tiles keep the same
            # block index across the inner axis -> fetched once per V block;
            # with n_m == 1 the activation block index is constant across the
            # whole grid -> DMA'd exactly once.
            grid=(n_v, n_m),
            in_specs=[
                pl.BlockSpec((tm, H), lambda j, i: (i, 0)),   # activation rows
                pl.BlockSpec((H, tv), lambda j, i: (0, j)),   # weight tile
                pl.BlockSpec((1, tv), lambda j, i: (0, j)),   # bias tile
            ],
            out_specs=pl.BlockSpec((tm, tv), lambda j, i: (i, j)),
        ),
        compiler_params=pltpu.CompilerParams(
            dimension_semantics=("parallel", "parallel"),
            vmem_limit_bytes=vmem_limit,
        ),
        cost_estimate=cost,
    )(x, w, b)


class EnsembleModelJAX:
    """JAX/Pallas analogue of fairseq EnsembleModel.forward_decoder.

    Each ensemble member holds (embedding, W_out, b_out).  The reference loop
    discards every decoder output except the last member's, so (our members
    being pure / side-effect free) only the last member is computed.  Its
    parameters are cast / laid out ONCE here so no per-call weight-sized HBM
    passes are spent on dtype conversion.
    """

    def __init__(self, params_per_model):
        self.models = params_per_model
        self.models_size = len(params_per_model)
        emb, w_out, b_out = params_per_model[-1]
        self._emb_bf16 = jnp.asarray(emb, jnp.bfloat16)        # (V, H)
        self._w_bf16 = jnp.asarray(w_out, jnp.bfloat16)        # (H, V)
        self._b_f32 = jnp.asarray(b_out, jnp.float32).reshape(1, -1)

    def forward(self):
        # Reference forward() is `pass`.
        return None

    def forward_decoder(self, tokens, temperature: float = 1.0):
        B, S = tokens.shape
        flat_tokens = tokens.reshape(-1)

        # glue: embedding lookup (gather) in plain JAX, already bf16.
        # TODO(synk): fuse this gather into the kernel via scalar-prefetched
        # token ids (pl.Element row gather) to drop one activation HBM pass.
        x = jnp.take(self._emb_bf16, flat_tokens, axis=0)          # (B*S, H)
        logits = decoder_output_proj(x, self._w_bf16, self._b_f32,
                                     temperature=temperature)      # (B*S, V)
        decoder_out = logits.reshape(B, S, -1)

        # TODO(synk): incremental_states / encoder_out plumbing has no tensor
        # compute and is omitted (reference passes them through to sub-models).
        return decoder_out


def build_ensemble(key, n_models=2, vocab=128, hidden=32):
    models = []
    for _ in range(n_models):
        k1, k2, k3, key = jax.random.split(key, 4)
        emb = jax.random.normal(k1, (vocab, hidden), jnp.float32) * 0.02
        w_out = jax.random.normal(k2, (hidden, vocab), jnp.float32) * 0.02
        b_out = jax.random.normal(k3, (1, vocab), jnp.float32) * 0.01
        models.append((emb, w_out, b_out))
    return models, key


if __name__ == "__main__":
    B, S, H, V = 2, 8, 32, 128
    key = jax.random.PRNGKey(0)
    models, key = build_ensemble(key, n_models=2, vocab=V, hidden=H)
    tok_key, key = jax.random.split(key)
    tokens = jax.random.randint(tok_key, (B, S), 0, V, dtype=jnp.int32)

    ensemble = EnsembleModelJAX(models)
    out = ensemble.forward_decoder(tokens, temperature=1.0)
    out = jax.block_until_ready(out)

    # Correctness check vs. a plain-JAX f32 reference (kernel uses bf16 inputs,
    # f32 accumulation, bf16 output -> loose-but-tight-enough tolerances for
    # these magnitudes).
    emb, w_out, b_out = models[-1]
    x_f32 = jnp.take(emb, tokens.reshape(-1), axis=0)
    ref_f32 = (x_f32 @ w_out + b_out).reshape(B, S, V)

    out_f32 = out.astype(jnp.float32)
    assert out.shape == (B, S, V)
    assert out.dtype == jnp.bfloat16
    assert bool(jnp.all(jnp.isfinite(out_f32)))
    assert jnp.allclose(out_f32, ref_f32, atol=2e-3, rtol=2e-2)

    print("KERNEL_OK")
</pallas_src>

<mosaic_0001>
module attributes {stable_mosaic.version = 11 : i64} {
  func.func @_decoder_proj_kernel(%arg0: i32, %arg1: i32, %arg2: memref<16x32xbf16, #tpu.memory_space<vmem>>, %arg3: memref<32x128xbf16, #tpu.memory_space<vmem>>, %arg4: memref<1x128xf32, #tpu.memory_space<vmem>>, %arg5: memref<16x128xbf16, #tpu.memory_space<vmem>>) attributes {dimension_semantics = [#tpu.dimension_semantics<parallel>, #tpu.dimension_semantics<parallel>], iteration_bounds = array<i64: 1, 1>, scalar_prefetch = 0 : i64, scratch_operands = 0 : i64, tpu.core_type = #tpu.core_type<tc>, window_params = [{transform_indices = @transform_0, window_bounds = array<i64: 16, 32>}, {transform_indices = @transform_1, window_bounds = array<i64: 32, 128>}, {transform_indices = @transform_2, window_bounds = array<i64: 1, 128>}, {transform_indices = @transform_3, window_bounds = array<i64: 16, 128>}]} {
    %c0 = arith.constant 0 : index
    %c0_0 = arith.constant 0 : index
    %0 = vector.load %arg2[%c0, %c0_0] : memref<16x32xbf16, #tpu.memory_space<vmem>>, vector<16x32xbf16>
    %c0_1 = arith.constant 0 : index
    %c0_2 = arith.constant 0 : index
    %1 = vector.load %arg3[%c0_1, %c0_2] : memref<32x128xbf16, #tpu.memory_space<vmem>>, vector<32x128xbf16>
    %cst = arith.constant dense<0.000000e+00> : vector<16x128xf32>
    %2 = tpu.matmul %0, %1, %cst {dimension_numbers = #tpu.dot_dimension_numbers<[1], [0], [0], [1], [0, 0, 1, 1], [], []>} : vector<16x32xbf16>, vector<32x128xbf16>, vector<16x128xf32> -> vector<16x128xf32>
    %c0_3 = arith.constant 0 : index
    %c0_4 = arith.constant 0 : index
    %3 = vector.load %arg4[%c0_3, %c0_4] : memref<1x128xf32, #tpu.memory_space<vmem>>, vector<1x128xf32>
    %4 = vector.broadcast %3 : vector<1x128xf32> to vector<16x128xf32>
    %5 = arith.addf %2, %4 : vector<16x128xf32>
    %6 = arith.truncf %5 : vector<16x128xf32> to vector<16x128xbf16>
    %c0_5 = arith.constant 0 : index
    %c0_6 = arith.constant 0 : index
    %7 = vector.load %arg5[%c0_5, %c0_6] : memref<16x128xbf16, #tpu.memory_space<vmem>>, vector<16x128xbf16>
    tpu.vector_store %arg5[%c0_5, %c0_6], %6 {strides = array<i32>} : memref<16x128xbf16, #tpu.memory_space<vmem>>, vector<16x128xbf16>,
    return
  }
  func.func @transform_0(%arg0: i32, %arg1: i32) -> (i32, i32) {
    %c0_i32 = arith.constant 0 : i32
    %c0_i32_0 = arith.constant 0 : i32
    return %arg1, %c0_i32 : i32, i32
  }
  func.func @transform_1(%arg0: i32, %arg1: i32) -> (i32, i32) {
    %c0_i32 = arith.constant 0 : i32
    %c0_i32_0 = arith.constant 0 : i32
    return %c0_i32, %arg0 : i32, i32
  }
  func.func @transform_2(%arg0: i32, %arg1: i32) -> (i32, i32) {
    %c0_i32 = arith.constant 0 : i32
    %c0_i32_0 = arith.constant 0 : i32
    return %c0_i32, %arg0 : i32, i32
  }
  func.func @transform_3(%arg0: i32, %arg1: i32) -> (i32, i32) {
    %c0_i32 = arith.constant 0 : i32
    return %arg1, %arg0 : i32, i32
  }
}

</mosaic_0001>

<bundles_post_ra>
// kernel: tpu_custom_call.1
= control target key start
LH: loop header
LB: loop body
LE: loop exit
PB: predicated region body
PF: predicated region fallthrough
CT: control target
= control target key end

     0   :  { %8 = vsyncpa [#allocation3], 0  ;;  %s329_s0 = inlined_call_operand.hbm [shape: bf16[16,32], index: 0, kind: input, shape index: {}]   ;;  %s330_s1 = inlined_call_operand.hbm [shape: bf16[32,128], index: 1, kind: input, shape index: {}]   ;;  %s331_s2 = inlined_call_operand.vmem [shape: f32[1,128], index: 2, kind: input, shape index: {}]   ;;  %s332_s3 = inlined_call_operand.hbm [shape: bf16[16,128], index: 3, kind: output, shape index: {}]  }
   0x1   :  { %9 = vsyncpa [#allocation6], 0 }
   0x2   :  { %10 = vsyncpa [#allocation4], 0  ;;  %s254_s12 = smov [#allocation2]   ;;  %s182_s16 = scalar_lea.hbm %s329_s0, 128 }
   0x3   :  { %s16_s13 = sshll.u32 %s254_s12, 4  ;;  %p183_p0 = scmp.ne.s32.totalorder %s329_s0, %s182_s16  ;;  %s17_s13 = int_to_ptr.vmem [resolvable:$true] %s16_s13 }
   0x4   :  { %p186_p1 = scmp.lt.u32.totalorder %s182_s16, %s329_s0 }
   0x6   :  { %p188_p2 = pnand %p186_p1, %p183_p0 }
   0x8   :  { %191 = shalt.err (!%p188_p2)
}
   0x9   :  { %s192_s21 = scalar_lea.vmem %s17_s13, 128  ;;  %p197_p4 = scmp.lt.s32.totalorder %s17_s13, %s17_s13 }
   0xa   :  { %p193_p3 = scmp.ne.s32.totalorder %s17_s13, %s192_s21  ;;  %p198_p5 = scmp.lt.s32.totalorder %s192_s21, %s192_s21 }
   0xc   :  { %p199_p6 = por %p198_p5, %p197_p4 }
   0xe   :  { %p200_p7 = pnand %p199_p6, %p193_p3 }
  0x10   :  { %203 = shalt.err (!%p200_p7)
}
  0x11   :  { %s255_s22 = smov 64   ;;  %s256_s23 = smov 4  }
  0x12   :  { %22 = dma.hbm_to_vmem [thread:$0]  %s329_s0, 128, %s17_s13, [#allocation3], %s255_s22, %s255_s22, %s256_s23  }
  0x13   :  { %s257_s26 = smov [#allocation5]   ;;  %s204_s30 = scalar_lea.hbm %s330_s1, 256 }
  0x14   :  { %s28_s27 = sshll.u32 %s257_s26, 4  ;;  %p205_p8 = scmp.ne.s32.totalorder %s330_s1, %s204_s30  ;;  %s29_s27 = int_to_ptr.vmem [resolvable:$true] %s28_s27 }
  0x15   :  { %p208_p9 = scmp.lt.u32.totalorder %s204_s30, %s330_s1 }
  0x17   :  { %p210_p10 = pnand %p208_p9, %p205_p8 }
  0x19   :  { %213 = shalt.err (!%p210_p10)
}
  0x1a   :  { %s214_s8 = scalar_lea.vmem %s29_s27, 256  ;;  %p219_p12 = scmp.lt.s32.totalorder %s29_s27, %s29_s27 }
  0x1b   :  { %p215_p11 = scmp.ne.s32.totalorder %s29_s27, %s214_s8  ;;  %p220_p13 = scmp.lt.s32.totalorder %s214_s8, %s214_s8 }
  0x1d   :  { %p221_p0 = por %p220_p13, %p219_p12 }
  0x1f   :  { %p222_p1 = pnand %p221_p0, %p215_p11 }
  0x21   :  { %225 = shalt.err (!%p222_p1)
}
  0x22   :  { %34 = dma.hbm_to_vmem [thread:$0]  %s330_s1, 256, %s29_s27, [#allocation6], %s255_s22, %s255_s22, %s256_s23  }
  0x23   :  { %248 = dma.done.wait [#allocation3], 128  }
  0x24   :  { %249 = vsyncadd [#allocation3], 4294967168 }
  0x25   :  { %250 = dma.done.wait [#allocation6], 256  }
  0x26   :  { %251 = vsyncadd [#allocation6], 4294967040  ;;  %v258_v0 = vmov 0.0   ;;  %vm259_vm0 = vmmov 0   ;;  %v179_v1 = vld [vmem:[#allocation5] sm:$0xff]   ;;  %v180_v2 = vld [vmem:[#allocation5 + $0x8] sm:$0xff]  }
  0x27   :  { %164 = vmatprep.subr.bf16.mxu0 %v258_v0  ;;  %168 = vmatprep.mubr.msk.bf16.mxu0 %vm259_vm0, %v258_v0  ;;  %v181_v3 = vld [vmem:[#allocation2] sm:$0xff]   ;;  %vm74_vm1 = vcmask 261120   ;;  %s260_s1 = smov [#allocation7]  }
  0x28   :  { %165 = vmatpush3.bf16.msra.mxu0 %v179_v1  ;;  %v147_v4 = vld [vmem:[%s331_s2] ss:$0 sm:$0xff]  ;;  %s134_s12 = sshll.u32 %s260_s1, 4  ;;  %s135_s12 = int_to_ptr.vmem [resolvable:$true] %s134_s12 }
  0x29   :  { %166 = vmatprep.subr.bf16.mxu0 %v258_v0  ;;  %s226_s13 = scalar_lea.vmem %s135_s12, 128  ;;  %p231_p3 = scmp.lt.s32.totalorder %s135_s12, %s135_s12 }
  0x2a   :  { %p227_p2 = scmp.ne.s32.totalorder %s135_s12, %s226_s13  ;;  %p232_p4 = scmp.lt.s32.totalorder %s226_s13, %s226_s13 }
  0x2c   :  { %167 = vmatpush3.bf16.msra.mxu0 %v180_v2  ;;  %p233_p5 = por %p232_p4, %p231_p3 }
  0x2e   :  { %p234_p6 = pnand %p233_p5, %p227_p2 }
  0x2f   :  { %169 = vmatmul.mubr.msk.bf16.vlgmr.msra.gmra.mrb[0].mxu0 %vm74_vm1, %v181_v3 }
 0x102   :  { %v112_v5 = vpop.f32.mrb[0].mxu0 }
 0x103   :  { %v170_v6 = vpop.f32.mrb[1].mxu0  ;;  %v113_v8 = vadd.f32 %v147_v4, %v112_v5 }
 0x104   :  { %v115_v7 = vpop.f32.mrb[2].mxu0 }
 0x105   :  { %v116_v9 = vadd.f32 %v147_v4, %v115_v7  ;;  %v171_v10 = vpop.f32.mrb[3].mxu0 }
 0x107   :  { %v159_v11 = vpack.c.bf16 %v116_v9, %v113_v8 }
 0x109   :  { %160 = vst [vmem:[#allocation7] sm:$0xff] %v159_v11  }
 0x10a   :  { %237 = shalt.err (!%p234_p6)
}
 0x10b   :  { %s238_s15 = scalar_lea.hbm %s332_s3, 128 }
 0x10c   :  { %p239_p7 = scmp.ne.s32.totalorder %s332_s3, %s238_s15  ;;  %p242_p8 = scmp.lt.u32.totalorder %s238_s15, %s332_s3 }
 0x10e   :  { %p244_p9 = pnand %p242_p8, %p239_p7 }
 0x110   :  { %247 = shalt.err (!%p244_p9)
}
 0x111   :  { %140 = dma.vmem_to_hbm [thread:$0]  %s135_s12, 128, %s332_s3, [#allocation4], %s255_s22, %s255_s22, %s256_s23  }
 0x112   :  { %252 = dma.done.wait [#allocation4], 128  }
 0x113   :  { %253 = vsyncadd [#allocation4], 4294967168 }
 0x114   :  { %144 = vsyncpa [#allocation3], 1 }
 0x115   :  { %145 = vsyncpa [#allocation6], 1 }
 0x116   :  { %146 = vsyncpa [#allocation4], 1 }

</bundles_post_ra>
